<compile_context>
chip_gen: v7x
topology: tpu7x:2x2x1
jax: 0.10.0
libtpu: 0.0.40
codegen_flags: <defaults>
</compile_context>

<pallas_src>
import jax
import jax.numpy as jnp
from jax.experimental import pallas as pl
from jax.experimental.pallas import tpu as pltpu


_LANE = 128
_SUBLANE_32BIT = 8
_NOMINAL_TILE_LANES = 2048             # starting lane tile (multiple of 128)
_DEFAULT_TARGET_TILE_BYTES = 2 * 1024 * 1024
_DEFAULT_VMEM_LIMIT_BYTES = 32 * 1024 * 1024
_V7X_TARGET_TILE_BYTES = 6 * 1024 * 1024
_V7X_VMEM_LIMIT_BYTES = 48 * 1024 * 1024
_MIN_SPLIT_BYTES = 512 * 1024          # split single-tile slabs bigger than this


def _round_up(a, b):
    return ((a + b - 1) // b) * b


def _ceil_div(a, b):
    return -(-a // b)


def _sublane_multiple(dtype):
    """Minimum sublane multiple for a dtype (sub-32-bit dtypes pack along sublanes):
    8 for 32-bit, 16 for 16-bit, 32 for 8-bit."""
    itemsize = jnp.dtype(dtype).itemsize
    return _SUBLANE_32BIT * max(1, 4 // itemsize)


def _generation_params():
    """(target_tile_bytes, vmem_limit_bytes) tuned per TPU generation."""
    target = _DEFAULT_TARGET_TILE_BYTES
    vmem_limit = _DEFAULT_VMEM_LIMIT_BYTES
    try:
        info = pltpu.get_tpu_info()
        vmem_cap = getattr(info, "vmem_capacity_bytes", None)
        # v7x: 64 MiB VMEM/TC but ~3.2 TB/s HBM -> larger tiles amortize the
        # per-grid-step overhead; keep double-buffered in+out footprint <= ~48 MiB.
        if vmem_cap is not None and vmem_cap <= 64 * 1024 * 1024:
            target = _V7X_TARGET_TILE_BYTES
            vmem_limit = _V7X_VMEM_LIMIT_BYTES
    except Exception:
        # Non-TPU backend / interpret mode: keep conservative defaults.
        pass
    return target, vmem_limit


def _choose_tiles(rows, lanes, itemsize, sublane, target_bytes):
    """Pick (tile_r, tile_l) for a (rows, lanes) slab.

    Lane tile is a multiple of 128, row tile a multiple of `sublane`; the tile
    is sized to ~target_bytes, growing whichever axis still has room, and the
    slab is split in two when it would otherwise collapse to a single large
    grid block (so both v7x TensorCores get work)."""
    rows_padded = _round_up(rows, sublane)
    lanes_padded = _round_up(lanes, _LANE)

    # 1) Nominal lane tile, then spend the rest of the byte budget on rows.
    tile_l = min(lanes_padded, _NOMINAL_TILE_LANES)
    rows_budget = max(sublane, target_bytes // (tile_l * itemsize))
    tile_r = min(rows_padded, max(sublane, (rows_budget // sublane) * sublane))

    # 2) Tile-starvation fix: tiny N*C but huge HW -> grow the lane tile past
    #    the nominal cap so each grid step still moves ~target_bytes.
    if tile_r >= rows_padded and tile_r * tile_l * itemsize < target_bytes:
        lane_budget = max(_LANE, target_bytes // (tile_r * itemsize))
        tile_l = min(lanes_padded, max(_LANE, (lane_budget // _LANE) * _LANE))

    # 3) Guarantee >= 2 grid blocks for mid-size slabs (v7x megacore sharding);
    #    on v5e/v6e this only adds one cheap extra grid step.
    total_bytes = rows_padded * lanes_padded * itemsize
    if (tile_r >= rows_padded and tile_l >= lanes_padded
            and total_bytes > _MIN_SPLIT_BYTES):
        if rows_padded >= 2 * sublane:
            tile_r = _round_up(_ceil_div(rows_padded, 2), sublane)
        elif lanes_padded >= 2 * _LANE:
            tile_l = _round_up(_ceil_div(lanes_padded, 2), _LANE)

    return tile_r, tile_l


def _scale2d_kernel(x_ref, s_ref, o_ref):
    # x_ref: (TILE_R, TILE_L)                 input tile (x.dtype)
    # s_ref: (TILE_R, 1) or (1, TILE_L)       float32 scale (broadcast multiply)
    # o_ref: (TILE_R, TILE_L)                 output tile (x.dtype)
    x = x_ref[...].astype(jnp.float32)
    o_ref[...] = (x * s_ref[...]).astype(o_ref.dtype)


def scale_2d(x, par, *, donate_x=False):
    """Equivalent of Scale_2d.forward: x * par[None, :, None, None].

    x:   (N, C, H, W) array
    par: (C,) array (kept in float32 for the multiply; result cast to x.dtype)
    donate_x: alias the output onto x's HBM buffer (caller must not reuse x).
    """
    N, C, H, W = x.shape
    HW = H * W
    itemsize = jnp.dtype(x.dtype).itemsize
    sublane = _sublane_multiple(x.dtype)
    target_bytes, vmem_limit = _generation_params()

    par_f32 = par.astype(jnp.float32)

    lane_dense_fallback = (HW % _LANE != 0) and ((C * HW) % _LANE == 0)
    if lane_dense_fallback:
        # rows = batch, lanes = channel*spatial: lane-dense even when HW % 128 != 0.
        rows, lanes = N, C * HW
        x2 = x.reshape(rows, lanes)
        scale = jnp.repeat(par_f32, HW).reshape(1, lanes)  # broadcast over sublanes
        s_block_shape = (1, None)      # lane-tiled below
        s_index_map = lambda r, t: (0, t)
    else:
        # rows = (batch, channel), lanes = spatial.
        rows, lanes = N * C, HW
        x2 = x.reshape(rows, lanes)
        scale = jnp.broadcast_to(par_f32, (N, C)).reshape(rows, 1)
        s_block_shape = (None, 1)      # row-tiled below
        s_index_map = lambda r, t: (r, 0)

    tile_r, tile_l = _choose_tiles(rows, lanes, itemsize, sublane, target_bytes)
    grid = (_ceil_div(rows, tile_r), _ceil_div(lanes, tile_l))

    s_block = (1, tile_l) if lane_dense_fallback else (tile_r, 1)

    out2 = pl.pallas_call(
        _scale2d_kernel,
        out_shape=jax.ShapeDtypeStruct((rows, lanes), x.dtype),
        grid_spec=pltpu.PrefetchScalarGridSpec(
            num_scalar_prefetch=0,
            grid=grid,
            in_specs=[
                pl.BlockSpec((tile_r, tile_l), lambda r, t: (r, t)),
                pl.BlockSpec(s_block, s_index_map),
            ],
            out_specs=pl.BlockSpec((tile_r, tile_l), lambda r, t: (r, t)),
        ),
        compiler_params=pltpu.CompilerParams(
            # Both grid axes are independent -> v7x can shard across its 2 TCs.
            # TODO(synk): if an xprof trace shows a single TC on v7x, switch the
            # row axis to pltpu.CORE_PARALLEL.
            dimension_semantics=("parallel", "parallel"),
            vmem_limit_bytes=vmem_limit,
        ),
        cost_estimate=pl.CostEstimate(
            flops=rows * lanes,
            transcendentals=0,
            bytes_accessed=2 * rows * lanes * itemsize + scale.size * 4,
        ),
        input_output_aliases=({0: 0} if donate_x else {}),
    )(x2, scale)

    return out2.reshape(N, C, H, W)


if __name__ == "__main__":
    # Module: nn.Parameter(torch.randn(out_ch)) constant-initialized to 0.001;
    # forward is x * par[None, :, None, None].
    N, C, H, W = 2, 4, 16, 16
    init_val = 0.001
    par = jnp.full((C,), init_val, dtype=jnp.float32)

    key = jax.random.PRNGKey(0)
    x = jax.random.normal(key, (N, C, H, W), dtype=jnp.float32)

    out = scale_2d(x, par)
    out = jax.block_until_ready(out)

    # Reference check (pure JAX, mirrors the PyTorch broadcast semantics).
    ref = x * par[None, :, None, None]
    assert out.shape == (N, C, H, W)
    assert jnp.allclose(out, ref, atol=1e-6, rtol=1e-6)

    print("KERNEL_OK")
</pallas_src>

<mosaic_0001>
module attributes {stable_mosaic.version = 11 : i64} {
  func.func @_scale2d_kernel(%arg0: i32, %arg1: i32, %arg2: memref<8x256xf32, #tpu.memory_space<vmem>>, %arg3: memref<8x1xf32, #tpu.memory_space<vmem>>, %arg4: memref<8x256xf32, #tpu.memory_space<vmem>>) attributes {dimension_semantics = [#tpu.dimension_semantics<parallel>, #tpu.dimension_semantics<parallel>], iteration_bounds = array<i64: 1, 1>, scalar_prefetch = 0 : i64, scratch_operands = 0 : i64, tpu.core_type = #tpu.core_type<tc>, window_params = [{transform_indices = @transform_0, window_bounds = array<i64: 8, 256>}, {transform_indices = @transform_1, window_bounds = array<i64: 8, 1>}, {transform_indices = @transform_2, window_bounds = array<i64: 8, 256>}]} {
    %c0 = arith.constant 0 : index
    %c0_0 = arith.constant 0 : index
    %0 = vector.load %arg2[%c0, %c0_0] : memref<8x256xf32, #tpu.memory_space<vmem>>, vector<8x256xf32>
    %c0_1 = arith.constant 0 : index
    %c0_2 = arith.constant 0 : index
    %1 = vector.load %arg3[%c0_1, %c0_2] : memref<8x1xf32, #tpu.memory_space<vmem>>, vector<8x1xf32>
    %2 = vector.broadcast %1 : vector<8x1xf32> to vector<8x256xf32>
    %3 = arith.mulf %0, %2 : vector<8x256xf32>
    %c0_3 = arith.constant 0 : index
    %c0_4 = arith.constant 0 : index
    %4 = vector.load %arg4[%c0_3, %c0_4] : memref<8x256xf32, #tpu.memory_space<vmem>>, vector<8x256xf32>
    tpu.vector_store %arg4[%c0_3, %c0_4], %3 {strides = array<i32>} : memref<8x256xf32, #tpu.memory_space<vmem>>, vector<8x256xf32>,
    return
  }
  func.func @transform_0(%arg0: i32, %arg1: i32) -> (i32, i32) {
    %c0_i32 = arith.constant 0 : i32
    return %arg0, %arg1 : i32, i32
  }
  func.func @transform_1(%arg0: i32, %arg1: i32) -> (i32, i32) {
    %c0_i32 = arith.constant 0 : i32
    %c0_i32_0 = arith.constant 0 : i32
    return %arg0, %c0_i32 : i32, i32
  }
  func.func @transform_2(%arg0: i32, %arg1: i32) -> (i32, i32) {
    %c0_i32 = arith.constant 0 : i32
    return %arg0, %arg1 : i32, i32
  }
}

</mosaic_0001>

<bundles_post_ra>
// kernel: tpu_custom_call.1
= control target key start
LH: loop header
LB: loop body
LE: loop exit
PB: predicated region body
PF: predicated region fallthrough
CT: control target
= control target key end

     0   :  { %7 = vsyncpa [#allocation3], 0  ;;  %s148_s0 = inlined_call_operand.hbm [shape: f32[8,256], index: 0, kind: input, shape index: {}]   ;;  %s149_s1 = inlined_call_operand.vmem [shape: f32[8,1], index: 1, kind: input, shape index: {}]   ;;  %s150_s2 = inlined_call_operand.hbm [shape: f32[8,256], index: 2, kind: output, shape index: {}]  }
   0x1   :  { %8 = vsyncpa [#allocation4], 0  ;;  %s103_s9 = smov [#allocation2]   ;;  %s55_s13 = scalar_lea.hbm %s148_s0, 256 }
   0x2   :  { %s15_s10 = sshll.u32 %s103_s9, 4  ;;  %p56_p0 = scmp.ne.s32.totalorder %s148_s0, %s55_s13  ;;  %s16_s10 = int_to_ptr.vmem [resolvable:$true] %s15_s10 }
   0x3   :  { %p59_p1 = scmp.lt.u32.totalorder %s55_s13, %s148_s0 }
   0x5   :  { %p61_p2 = pnand %p59_p1, %p56_p0 }
   0x7   :  { %64 = shalt.err (!%p61_p2)
}
   0x8   :  { %s65_s18 = scalar_lea.vmem %s16_s10, 256  ;;  %p70_p4 = scmp.lt.s32.totalorder %s16_s10, %s16_s10 }
   0x9   :  { %p66_p3 = scmp.ne.s32.totalorder %s16_s10, %s65_s18  ;;  %p71_p5 = scmp.lt.s32.totalorder %s65_s18, %s65_s18 }
   0xb   :  { %p72_p6 = por %p71_p5, %p70_p4 }
   0xd   :  { %p73_p7 = pnand %p72_p6, %p66_p3 }
   0xf   :  { %76 = shalt.err (!%p73_p7)
}
  0x10   :  { %18 = dma.hbm_to_vmem [thread:$0]  %s148_s0, 256, %s16_s10, [#allocation3]  }
  0x11   :  { %99 = dma.done.wait [#allocation3], 256  }
  0x12   :  { %100 = vsyncadd [#allocation3], 4294967040  ;;  %v104_v0 = vmov 0   ;;  %v26_v1 = vld [vmem:[%s149_s1] sm:$0xff]  ;;  %v25_v3 = vld [vmem:[#allocation2 + $0x8] sm:$0xff]  ;;  %s105_s23 = smov [#allocation5]  }
  0x13   :  { %54 = vset.pattern.permute.xlu0 %v104_v0  ;;  %v24_v2 = vld [vmem:[#allocation2] sm:$0xff]  ;;  %s42_s24 = sshll.u32 %s105_s23, 4  ;;  %s43_s24 = int_to_ptr.vmem [resolvable:$true] %s42_s24 }
  0x14   :  { %29 = vperm.xlu0 %54, %v26_v1   ;;  %s77_s0 = scalar_lea.vmem %s43_s24, 256  ;;  %p82_p9 = scmp.lt.s32.totalorder %s43_s24, %s43_s24 }
  0x15   :  { %p78_p8 = scmp.ne.s32.totalorder %s43_s24, %s77_s0  ;;  %p83_p10 = scmp.lt.s32.totalorder %s77_s0, %s77_s0 }
  0x17   :  { %p84_p11 = por %p83_p10, %p82_p9 }
  0x19   :  { %p85_p12 = pnand %p84_p11, %p78_p8 }
  0x93   :  { %v30_v4 = vpop.permute.xlu0 %29 }
  0x94   :  { %v32_v5 = vmul.f32 %v30_v4, %v24_v2  ;;  %v33_v6 = vmul.f32 %v30_v4, %v25_v3 }
  0x96   :  { %34 = vst [vmem:[#allocation5] sm:$0xff] %v32_v5  ;;  %35 = vst [vmem:[#allocation5 + $0x8] sm:$0xff] %v33_v6 }
  0x97   :  { %88 = shalt.err (!%p85_p12)
}
  0x98   :  { %s89_s26 = scalar_lea.hbm %s150_s2, 256 }
  0x99   :  { %p90_p13 = scmp.ne.s32.totalorder %s150_s2, %s89_s26  ;;  %p93_p0 = scmp.lt.u32.totalorder %s89_s26, %s150_s2 }
  0x9b   :  { %p95_p1 = pnand %p93_p0, %p90_p13 }
  0x9d   :  { %98 = shalt.err (!%p95_p1)
}
  0x9e   :  { %45 = dma.vmem_to_hbm [thread:$0]  %s43_s24, 256, %s150_s2, [#allocation4]  }
  0x9f   :  { %101 = dma.done.wait [#allocation4], 256  }
  0xa0   :  { %102 = vsyncadd [#allocation4], 4294967040 }
  0xa1   :  { %49 = vsyncpa [#allocation3], 1 }
  0xa2   :  { %50 = vsyncpa [#allocation4], 1 }

</bundles_post_ra>
